<compile_context>
chip_gen: v7x
topology: tpu7x:2x2x1
jax: 0.10.0
libtpu: 0.0.40
codegen_flags: <defaults>
</compile_context>

<pallas_src>
import functools

import jax
import jax.numpy as jnp
from jax.experimental import pallas as pl
from jax.experimental.pallas import tpu as pltpu


def _round_up(x, m):
    return ((x + m - 1) // m) * m


def _patch_embed_kernel(x_ref, w_ref, b_ref, o_ref):
    # x_ref: (TILE_M, K_pad)  patches tile (compute dtype, e.g. bf16)
    # w_ref: (K_pad, E_pad)   projection weight, resident across grid steps
    # b_ref: (1, E_pad)       bias, float32
    # o_ref: (TILE_M, E_pad)
    acc = jnp.dot(x_ref[...], w_ref[...], preferred_element_type=jnp.float32)
    o_ref[...] = (acc + b_ref[...]).astype(o_ref.dtype)


def _choose_tile_m(M, tile_m_max):
    """M tile: multiple of 16 (bf16 sublane packing), capped at tile_m_max, and
    sized so the grid has an even number (>=2) of steps when M allows it
    (v7x has 2 TensorCores sharding the parallel axis)."""
    cap = max(16, (tile_m_max // 16) * 16)
    cap = min(cap, _round_up(M, 16))
    n_steps = pl.cdiv(M, cap)
    if n_steps < 2:
        n_steps = 2
    elif n_steps % 2 == 1:
        n_steps += 1
    return max(16, _round_up(pl.cdiv(M, n_steps), 16))


def patch_embed(x, weight, bias, patch_size, *, compute_dtype=jnp.bfloat16,
                out_dtype=None, tile_m_max=1024):
    """DeiT PatchEmbed forward.

    x: (B, C, H, W) NCHW; weight: (E, C, ph, pw) as nn.Conv2d; bias: (E,).
    Returns (B, num_patches, E). Inputs are computed in `compute_dtype` with
    f32 MXU accumulation. `out_dtype` defaults to `compute_dtype` (halves the
    dominant HBM writeback stream); pass out_dtype=x.dtype for f32 output.
    """
    B, C, H, W = x.shape
    ph, pw = patch_size
    assert H % ph == 0 and W % pw == 0, "image size must be divisible by patch size"
    gh, gw = H // ph, W // pw
    num_patches = gh * gw
    E = weight.shape[0]
    K = C * ph * pw
    if out_dtype is None:
        out_dtype = compute_dtype

    M = B * num_patches
    E_pad = _round_up(E, 128)          # lane-dense output stores
    K_pad = _round_up(K, 128)          # lane-aligned loads / full MXU K passes
    tile_m = _choose_tile_m(M, tile_m_max)
    M_pad = _round_up(M, tile_m)

    # Unfold (B,C,H,W) -> (B*P, K) in the conv's (C, ph, pw) reduction order.
    # Cast to compute dtype FIRST so any materialized relayout is half-width;
    # with allow_input_fusion the whole chain fuses into the input DMA.
    xc = x.astype(compute_dtype)
    patches = xc.reshape(B, C, gh, ph, gw, pw)
    patches = patches.transpose(0, 2, 4, 1, 3, 5).reshape(M, K)
    if M_pad != M or K_pad != K:
        patches = jnp.pad(patches, ((0, M_pad - M), (0, K_pad - K)))

    # Conv weight (E, C, ph, pw) -> dense projection (K_pad, E_pad); f32 bias.
    w_mat = weight.reshape(E, K).T.astype(compute_dtype)
    b_vec = bias.astype(jnp.float32)
    if K_pad != K or E_pad != E:
        w_mat = jnp.pad(w_mat, ((0, K_pad - K), (0, E_pad - E)))
    if E_pad != E:
        b_vec = jnp.pad(b_vec, (0, E_pad - E))
    b_mat = b_vec.reshape(1, E_pad)

    # Explicit VMEM budget: double-buffered tiles + resident weight/bias.
    in_itm = jnp.dtype(compute_dtype).itemsize
    out_itm = jnp.dtype(out_dtype).itemsize
    vmem_needed = (2 * tile_m * K_pad * in_itm        # patches tile (x2 buffers)
                   + 2 * K_pad * E_pad * in_itm       # resident weight (conservative x2)
                   + 2 * E_pad * 4                    # bias
                   + 2 * tile_m * E_pad * out_itm)    # output tile (x2 buffers)
    vmem_limit = int(min(64 * 1024 * 1024, max(2 * vmem_needed, 32 * 1024 * 1024)))

    out = pl.pallas_call(
        _patch_embed_kernel,
        out_shape=jax.ShapeDtypeStruct((M_pad, E_pad), out_dtype),
        grid=(M_pad // tile_m,),
        in_specs=[
            # (If profiling on v5e shows exposed input DMA, add
            #  pipeline_mode=pl.Buffered(3) on this spec.)
            pl.BlockSpec((tile_m, K_pad), lambda i: (i, 0)),
            pl.BlockSpec((K_pad, E_pad), lambda i: (0, 0)),   # resident weight
            pl.BlockSpec((1, E_pad), lambda i: (0, 0)),       # resident f32 bias
        ],
        out_specs=pl.BlockSpec((tile_m, E_pad), lambda i: (i, 0)),
        compiler_params=pltpu.CompilerParams(
            dimension_semantics=("parallel",),
            # let the unfold/cast/pad producer chain of `patches` fuse into the
            # kernel's input DMA (no HBM intermediate when XLA agrees).
            allow_input_fusion=[True, False, False],
            vmem_limit_bytes=vmem_limit,
        ),
    )(patches, w_mat, b_mat)

    return out[:M, :E].reshape(B, num_patches, E)


if __name__ == "__main__":
    # Small, module-consistent shapes: img=16, patch=4, in_chans=4, embed_dim=32
    B, C, H, W = 2, 4, 16, 16
    patch = (4, 4)
    embed_dim = 32

    key = jax.random.PRNGKey(0)
    kx, kw, kb = jax.random.split(key, 3)
    x = jax.random.normal(kx, (B, C, H, W), dtype=jnp.float32)
    weight = jax.random.normal(
        kw, (embed_dim, C, patch[0], patch[1]), dtype=jnp.float32) * 0.02
    bias = jax.random.normal(kb, (embed_dim,), dtype=jnp.float32) * 0.02

    fn = jax.jit(functools.partial(patch_embed, patch_size=patch))
    out = fn(x, weight, bias)
    out = jax.block_until_ready(out)

    # Reference via lax conv (NCHW) + flatten(2).transpose(1,2), full f32.
    ref = jax.lax.conv_general_dilated(
        x, weight, window_strides=patch, padding="VALID",
        dimension_numbers=("NCHW", "OIHW", "NCHW"))
    ref = ref + bias[None, :, None, None]
    ref = ref.reshape(B, embed_dim, -1).transpose(0, 2, 1)

    assert out.shape == (B, (H // patch[0]) * (W // patch[1]), embed_dim)
    # bf16 compute/output with f32 MXU accumulation -> loose tolerance vs f32 conv.
    out_f32 = out.astype(jnp.float32)
    max_err = float(jnp.max(jnp.abs(out_f32 - ref)))
    assert jnp.allclose(out_f32, ref, atol=2e-2, rtol=2e-2), max_err

    print("KERNEL_OK")
</pallas_src>

<mosaic_0001>
module attributes {stable_mosaic.version = 11 : i64} {
  func.func @_patch_embed_kernel(%arg0: i32, %arg1: memref<16x128xbf16, #tpu.memory_space<vmem>>, %arg2: memref<128x128xbf16, #tpu.memory_space<vmem>>, %arg3: memref<1x128xf32, #tpu.memory_space<vmem>>, %arg4: memref<16x128xbf16, #tpu.memory_space<vmem>>) attributes {dimension_semantics = [#tpu.dimension_semantics<parallel>], iteration_bounds = array<i64: 2>, scalar_prefetch = 0 : i64, scratch_operands = 0 : i64, tpu.core_type = #tpu.core_type<tc>, window_params = [{transform_indices = @transform_0, window_bounds = array<i64: 16, 128>}, {pipeline_mode = #tpu.pipeline_mode<synchronous>, transform_indices = @transform_1, window_bounds = array<i64: 128, 128>}, {pipeline_mode = #tpu.pipeline_mode<synchronous>, transform_indices = @transform_2, window_bounds = array<i64: 1, 128>}, {transform_indices = @transform_3, window_bounds = array<i64: 16, 128>}]} {
    %c0 = arith.constant 0 : index
    %c0_0 = arith.constant 0 : index
    %0 = vector.load %arg1[%c0, %c0_0] : memref<16x128xbf16, #tpu.memory_space<vmem>>, vector<16x128xbf16>
    %c0_1 = arith.constant 0 : index
    %c0_2 = arith.constant 0 : index
    %1 = vector.load %arg2[%c0_1, %c0_2] : memref<128x128xbf16, #tpu.memory_space<vmem>>, vector<128x128xbf16>
    %cst = arith.constant dense<0.000000e+00> : vector<16x128xf32>
    %2 = tpu.matmul %0, %1, %cst {dimension_numbers = #tpu.dot_dimension_numbers<[1], [0], [0], [1], [0, 0, 1, 1], [], []>} : vector<16x128xbf16>, vector<128x128xbf16>, vector<16x128xf32> -> vector<16x128xf32>
    %c0_3 = arith.constant 0 : index
    %c0_4 = arith.constant 0 : index
    %3 = vector.load %arg3[%c0_3, %c0_4] : memref<1x128xf32, #tpu.memory_space<vmem>>, vector<1x128xf32>
    %4 = vector.broadcast %3 : vector<1x128xf32> to vector<16x128xf32>
    %5 = arith.addf %2, %4 : vector<16x128xf32>
    %6 = arith.truncf %5 : vector<16x128xf32> to vector<16x128xbf16>
    %c0_5 = arith.constant 0 : index
    %c0_6 = arith.constant 0 : index
    %7 = vector.load %arg4[%c0_5, %c0_6] : memref<16x128xbf16, #tpu.memory_space<vmem>>, vector<16x128xbf16>
    tpu.vector_store %arg4[%c0_5, %c0_6], %6 {strides = array<i32>} : memref<16x128xbf16, #tpu.memory_space<vmem>>, vector<16x128xbf16>,
    return
  }
  func.func @transform_0(%arg0: i32) -> (i32, i32) {
    %c0_i32 = arith.constant 0 : i32
    %c0_i32_0 = arith.constant 0 : i32
    return %arg0, %c0_i32 : i32, i32
  }
  func.func @transform_1(%arg0: i32) -> (i32, i32) {
    %c0_i32 = arith.constant 0 : i32
    %c0_i32_0 = arith.constant 0 : i32
    %c0_i32_1 = arith.constant 0 : i32
    return %c0_i32, %c0_i32_0 : i32, i32
  }
  func.func @transform_2(%arg0: i32) -> (i32, i32) {
    %c0_i32 = arith.constant 0 : i32
    %c0_i32_0 = arith.constant 0 : i32
    %c0_i32_1 = arith.constant 0 : i32
    return %c0_i32, %c0_i32_0 : i32, i32
  }
  func.func @transform_3(%arg0: i32) -> (i32, i32) {
    %c0_i32 = arith.constant 0 : i32
    %c0_i32_0 = arith.constant 0 : i32
    return %arg0, %c0_i32 : i32, i32
  }
}

</mosaic_0001>

<bundles_post_ra>
// kernel: patch_embed.2
= control target key start
LH: loop header
LB: loop body
LE: loop exit
PB: predicated region body
PF: predicated region fallthrough
CT: control target
= control target key end

     0   :  { %s771_s0 = inlined_call_operand.vmem [shape: bf16[128,128], index: 0, kind: input, shape index: {}]   ;;  %s772_s1 = inlined_call_operand.vmem [shape: f32[1,128], index: 1, kind: input, shape index: {}]   ;;  %s773_s2 = inlined_call_operand.vmem [shape: bf16[32,64], index: 2, kind: input, shape index: {}]   ;;  %s774_s3 = inlined_call_operand.<no memory space> [shape: bf16[], index: 3, kind: input, shape index: {}]   ;;  %s775_s4 = inlined_call_operand.hbm [shape: bf16[32,128], index: 4, kind: output, shape index: {}]  }
   0x1   :  { %v9_v0 = vstv %s774_s3 }
   0x2   :  { %v638_v1 = vunpack.i.l.bf16 %v9_v0 }
   0x3   :  { %14 = vsyncpa [#allocation8], 0 }
   0x4   :  { %16 = vsyncpa [#allocation8 + $0x1], 0  ;;  %s640_s17 = smov 0   ;;  %s642_s18 = smov 0  }
   0x5   :  { %s644_s19 = smov 0   ;;  %s646_s20 = smov 0  }
   0x6 LB: > { %s661_s3 = sadd.s32 4294967295, %s603_s20   ;;  %s427_s21 = sadd.s32 4294967294, %s603_s20   ;;  %s603_s20 = sphi %s646_s20, %s781_s20   ;;  %s599_s19 = sphi %s644_s19, %s780_s19   ;;  %s595_s18 = sphi %s642_s18, %s779_s18   ;;  %s591_s17 = sphi %s640_s17, %s778_s17  }
   0x7   : > { %s665_s22 = sadd.s32 1, %s603_s20   ;;  %s97_s23 = sadd.s32 1, %s599_s19 }
   0x8   : > { %s94_s24 = ssub.s32 %s603_s20, %s665_s22  ;;  %p107_p0 = scmp.ne.s32.totalorder %s599_s19, %s595_s18 }
   0x9   : > { %p95_p1 = scmp.eq.s32.totalorder %s94_s24, 0  ;;  %p108_p2 = scmp.eq.s32.totalorder %s661_s3, 1 }
   0xa   : > { %p113_p3 = scmp.ne.s32.totalorder %s595_s18, %s591_s17  ;;  %p114_p4 = scmp.eq.s32.totalorder %s427_s21, 1 }
   0xb   : > { %s676_s25 = scalar_select %p95_p1, %s599_s19, %s97_s23  }
   0xc   : > { %p678_p5 = por %p108_p2, %p107_p0  ;;  %p682_p6 = por %p114_p4, %p113_p3 }
   0xd   : > { %p430_p7 = scmp.ge.s32.totalorder %s603_s20, 1  ;;  %p147_p8 = scmp.lt.s32.totalorder %s603_s20, 3 }
   0xf   : > { %p148_p9 = pnand %p430_p7, %p147_p8 }
  0x11   : > { %151 = sbr.rel (%p148_p9) target bundleno = 290 (0x122), region = 32 }
  0x18   : > { %v532_v2 = vld [vmem:[%s771_s0] sm:$0xff]   ;;  %v605_v3 = vmov 0.0   ;;  %v190_v4 = vlaneseq  ;;  %v533_v5 = vld [vmem:[%s771_s0 + $0x8] sm:$0xff]   ;;  %vm606_vm0 = vmmov 0   ;;  %s432_s6 = sshll.u32 %s661_s3, 1  ;;  %v534_v7 = vld [vmem:[%s771_s0 + $0x10] sm:$0xff]  }
  0x19   : > { %469 = vmatprep.subr.bf16.mxu0 %v605_v3  ;;  %485 = vmatprep.mubr.msk.bf16.mxu0 %vm606_vm0, %v605_v3  ;;  %p172_p10 = scmp.lt.s32.totalorder %s432_s6, 3  ;;  %v535_v9 = vld [vmem:[%s771_s0 + $0x18] sm:$0xff]   ;;  %v536_v16 = vld [vmem:[%s771_s0 + $0x20] sm:$0xff]   ;;  %v537_v17 = vld [vmem:[%s771_s0 + $0x28] sm:$0xff]   ;;  %s168_s5 = sand.u32 1, %s595_s18  }
  0x1a   : > { %470 = vmatpush3.bf16.msra.mxu0 %v532_v2  ;;  %v191_v6 = vand.u32 127, %v190_v4  ;;  %v538_v18 = vld [vmem:[%s771_s0 + $0x30] sm:$0xff]   ;;  %v539_v19 = vld [vmem:[%s771_s0 + $0x38] sm:$0xff]   ;;  %v435_v21 = vld [vmem:[%s772_s1] ss:$0 sm:$0xff]  ;;  %s454_s11 = sshll.u32 %s661_s3, 7 }
  0x1b   : > { %471 = vmatprep.subr.bf16.mxu0 %v605_v3  ;;  %s783_s6 = smov (!%p172_p10, %s432_s6), 3  ;;  %s728_s14 = scalar_lea.hbm %s775_s4, %s454_s11 }
  0x1c   : > { %s433_s9 = sshll.u32 %s783_s6, 2  ;;  %vm193_vm1 = vcmp.lt.s32.totalorder %v191_v6, 64  ;;  %s431_s6 = sshll.u32 %s168_s5, 3 }
  0x1d   : > { %s175_s12 = scalar_lea.vmem %s773_s2, %s433_s9  ;;  %s170_s9 = scalar_lea.vmem [#allocation7], %s431_s6 }
  0x1e   : > { %472 = vmatpush3.bf16.msra.mxu0 %v533_v5  ;;  %v187_v8 = vld [vmem:[%s175_s12] sm:$0xff]   ;;  %s365_s10 = sshll.u32 %s170_s9, 4  ;;  %s730_s15 = scalar_lea.sflag [#allocation8], %s168_s5  ;;  %s723_s10 = int_to_ptr.vmem [resolvable:$true] %s365_s10 }
  0x1f   : > { %473 = vmatprep.subr.bf16.mxu0 %v605_v3  ;;  %v188_v10 = vunpack.c.l.bf16 %v187_v8  ;;  %v209_v11 = vunpack.c.h.bf16 %v187_v8  ;;  %s541_s16 = scalar_lea.vmem %s723_s10, 128  ;;  %s607_s3 = smov [#allocation7]  }
  0x20   : > { %p542_p11 = scmp.ne.s32.totalorder %s723_s10, %s541_s16  ;;  %s545_s21 = sshll.u32 %s607_s3, 4  ;;  %s546_s21 = int_to_ptr.vmem [resolvable:$false] %s545_s21 }
  0x21   : > { %v194_v12 = vsel %vm193_vm1, %v188_v10, %v638_v1  ;;  %v215_v13 = vsel %vm193_vm1, %v209_v11, %v638_v1  ;;  %s547_s23 = scalar_lea.vmem %s546_s21, 256  ;;  %p548_p0 = scmp.lt.s32.totalorder %s723_s10, %s546_s21 }
  0x22   : > { %474 = vmatpush3.bf16.msra.mxu0 %v534_v7  ;;  %v195_v14 = vpack.c.bf16 %v605_v3, %v194_v12  ;;  %v217_v15 = vpack.c.bf16 %v605_v3, %v215_v13  ;;  %p543_p12 = pnand %p542_p11, %p678_p5  ;;  %p549_p1 = scmp.lt.s32.totalorder %s547_s23, %s541_s16 }
  0x23   : > { %475 = vmatprep.subr.bf16.mxu0 %v605_v3 }
  0x24   : > { %197 = vst [vmem:[#allocation9] sm:$0xf] %v195_v14  ;;  %219 = vst [vmem:[#allocation9 + $0x4] sm:$0xf] %v217_v15  ;;  %p544_p13 = pneg %p543_p12  ;;  %p550_p2 = por %p549_p1, %p548_p0 }
  0x26   : > { %476 = vmatpush3.bf16.msra.mxu0 %v535_v9  ;;  %p551_p3 = pnand %p550_p2, %p544_p13 }
  0x27   : > { %477 = vmatprep.subr.bf16.mxu0 %v605_v3 }
  0x2a   : > { %478 = vmatpush3.bf16.msra.mxu0 %v536_v16 }
  0x2b   : > { %479 = vmatprep.subr.bf16.mxu0 %v605_v3  ;;  %v540_v20 = vld [vmem:[#allocation9] sm:$0xff]  }
  0x2e   : > { %480 = vmatpush3.bf16.msra.mxu0 %v537_v17 }
  0x2f   : > { %481 = vmatprep.subr.bf16.mxu0 %v605_v3 }
  0x32   : > { %482 = vmatpush3.bf16.msra.mxu0 %v538_v18 }
  0x33   : > { %483 = vmatprep.subr.bf16.mxu0 %v605_v3 }
  0x36   : > { %484 = vmatpush3.bf16.msra.mxu0 %v539_v19 }
  0x39   : > { %486 = vmatmul.mubr.bf16.vlgmr.msra.gmra.mrb[0].mxu0 %v540_v20 }
 0x10c   : > { %v334_v22 = vpop.f32.mrb[0].mxu0 }
 0x10d   : > { %v487_v23 = vpop.f32.mrb[1].mxu0  ;;  %v335_v25 = vadd.f32 %v435_v21, %v334_v22 }
 0x10e   : > { %v337_v24 = vpop.f32.mrb[2].mxu0 }
 0x10f   : > { %v338_v26 = vadd.f32 %v435_v21, %v337_v24  ;;  %v488_v27 = vpop.f32.mrb[3].mxu0 }
 0x111   : > { %v458_v28 = vpack.c.bf16 %v338_v26, %v335_v25 }
 0x113   : > { %459 = vst [vmem:[%s170_s9] sm:$0xff] %v458_v28  }
 0x114   : > { %554 = shalt.err (!%p551_p3)
}
 0x115   : > { %s555_s24 = scalar_lea.hbm %s728_s14, 128  ;;  %s559_s30 = scalar_lea.hbm %s775_s4, 256 }
 0x116   : > { %p556_p4 = scmp.ne.s32.totalorder %s728_s14, %s555_s24  ;;  %p560_p9 = scmp.lt.u32.totalorder %s728_s14, %s775_s4 }
 0x117   : > { %p561_p10 = scmp.lt.u32.totalorder %s559_s30, %s555_s24  ;;  %p563_p12 = scmp.lt.u32.totalorder %s555_s24, %s728_s14 }
 0x118   : > { %p557_p7 = pnand %p556_p4, %p678_p5 }
 0x119   : > { %p562_p11 = por %p561_p10, %p560_p9 }
 0x11a   : > { %p558_p8 = pneg %p557_p7 }
 0x11b   : > { %p564_p13 = por %p563_p12, %p562_p11 }
 0x11d   : > { %p565_p0 = pnand %p564_p13, %p558_p8 }
 0x11f   : > { %568 = shalt.err (!%p565_p0)
}
 0x120   : > { %s608_s7 = smov 64   ;;  %s609_s8 = smov 4  }
 0x121   : > { %489 = dma.vmem_to_hbm [thread:$0]  (%p678_p5), %s723_s10, 128, %s728_s14, %s730_s15, %s608_s7, %s608_s7, %s609_s8  }
 0x122 PF: > { %p495_p1 = scmp.ge.s32.totalorder %s603_s20, 2  ;;  %s380_s9 = sand.u32 1, %s591_s17  }
 0x123   : > { %s381_s11 = scalar_lea.sflag [#allocation8], %s380_s9 }
 0x124   : > { %p492_p2 = pnand %p495_p1, %p682_p6 }
 0x126   : > { %586 = dma.done.wait (!%p492_p2), %s381_s11, 128  }
 0x127   : > { %588 = vsyncadd (!%p492_p2), %s381_s11, 4294967168  ;;  %p19_p3 = scmp.ge.s32.totalorder %s665_s22, 4   ;;  %s778_s17 = smov %s595_s18 }
 0x128   : > { %s779_s18 = smov %s599_s19  ;;  %s780_s19 = smov %s676_s25 }
 0x129   : > { %s781_s20 = smov %s665_s22  ;;  %21 = sbr.rel (!%p19_p3) target bundleno = 6 (0x6), region = 69 }
 0x130   :  { %386 = vsyncpa [#allocation8], 1 }
 0x131   :  { %388 = vsyncpa [#allocation8 + $0x1], 1 }

</bundles_post_ra>
